<compile_context>
chip_gen: v6e
topology: v6e:2x2x1
jax: 0.10.0
libtpu: 0.0.40
codegen_flags: <defaults>
</compile_context>

<pallas_src>
import functools

import jax
import jax.numpy as jnp
from jax.experimental import pallas as pl
from jax.experimental.pallas import tpu as pltpu


def _conv_clamp_kernel(x_ref, w_ref, b_ref, m_ref, o_ref, xbuf_ref, *,
                       Nb, C, KH, KW, PH, PW, W, B, interior,
                       compute_dtype, min_val, max_val):
    # x_ref   : (Nb, C, H*W)       raw images, f32 (no wrapper pad / cast)
    # w_ref   : (OC, KH*KW*Cp)     packed bf16 weights (resident)
    # b_ref   : (OC, 1)            bias, f32 (resident)
    # m_ref   : (KW, H*W)          per-kw column-validity masks (resident)
    # o_ref   : (Nb, OC, H*W)      compact lane-dense output
    # xbuf_ref: (Cp, S) f32        flat "padded" image scratch

    # Zero the scratch every step: covers height padding, the +/-PW slack and
    # the unused padded-channel rows.  Cheap, and safe under megacore
    # partitioning of the parallel grid axis (no program_id==0 init trick).
    xbuf_ref[...] = jnp.zeros_like(xbuf_ref)

    w = w_ref[...]                                    # (OC, K) resident weights
    bias = b_ref[...]                                 # (OC, 1) f32
    masks = m_ref[...]                                # (KW, B)
    mask_rows = [masks[kw:kw + 1, :] for kw in range(KW)]   # hoisted slices

    for i in range(Nb):                               # static unroll over images
        # In-kernel "same" padding: write the raw image interior into the
        # zeroed flat buffer (lane-aligned start).
        xbuf_ref[0:C, interior:interior + B] = x_ref[i].astype(xbuf_ref.dtype)

        xv = xbuf_ref[...].astype(compute_dtype)      # (Cp, S), single bf16 cast

        # Build the stacked rhs (KH*KW*Cp, B) for ONE fused K-contraction.
        # Each tap is a static lane shift of the flat image; pieces are 16-row
        # (tile-aligned) so the sublane concatenation is trivial.
        pieces = []
        for kh in range(KH):
            for kw in range(KW):
                start = interior - PH * W + kh * W + (kw - PW)
                sl = xv[:, start:start + B]           # (Cp, B) shifted view
                if kw != PW:                          # kill width-boundary wrap
                    sl = sl * mask_rows[kw]
                pieces.append(sl)
        rhs = jnp.concatenate(pieces, axis=0)         # (KH*KW*Cp, B) bf16

        # Single MXU matmul with f32 accumulation, then bias + clamp on VPU.
        acc = jnp.dot(w, rhs, preferred_element_type=jnp.float32)   # (OC, B)
        acc = acc + bias
        acc = jnp.maximum(acc, min_val)               # clamp_min
        acc = jnp.minimum(acc, max_val)               # clamp_max
        o_ref[i] = acc.astype(o_ref.dtype)


def conv2d_clamp(x, weight, bias, min_val, max_val, *,
                 images_per_step=1, compute_dtype=jnp.bfloat16):
    """Conv2d (stride=1, 'same' padding, odd kernel) + clamp.  NCHW in / out."""
    N, C, H, W = x.shape
    OC, Cw, KH, KW = weight.shape
    assert Cw == C, "channel mismatch"
    assert KH % 2 == 1 and KW % 2 == 1, "only odd kernels / 'same' padding"
    PH, PW = KH // 2, KW // 2
    assert W > PW, "width too small for this kernel size"
    Nb = images_per_step
    assert N % Nb == 0

    B = H * W                                    # compact output positions/image
    Cp = ((C + 15) // 16) * 16                   # bf16 sublane-packing aligned
    K = KH * KW * Cp

    lead = PH * W + PW                           # zero slack needed before image
    interior = ((lead + 127) // 128) * 128       # lane-aligned interior offset
    S = interior + B + lead                      # flat scratch length

    out_dtype = x.dtype

    # Zero-copy layout prep: metadata reshape only (no pad, no cast, no im2col).
    x_flat = x.reshape(N, C, B)

    # Pack weights once: column (t*Cp + c) of row oc is weight[oc, c, kh, kw]
    # with t = kh*KW + kw, zeros for the padded channels (matches rhs rows).
    w_perm = jnp.transpose(weight, (0, 2, 3, 1)).reshape(OC, KH * KW, C)
    w_packed = jnp.pad(w_perm, ((0, 0), (0, 0), (0, Cp - C)))
    w_packed = w_packed.reshape(OC, K).astype(compute_dtype)
    b_col = bias.astype(jnp.float32).reshape(OC, 1)

    # Per-kw column masks: the flat layout wraps at row ends; these zero the
    # columns that 'same' width padding would have zeroed.
    col = jnp.arange(B, dtype=jnp.int32) % W
    mask_rows = []
    for kw in range(KW):
        d = kw - PW
        lo, hi = max(0, -d), min(W, W - d)
        mask_rows.append(((col >= lo) & (col < hi)).astype(compute_dtype))
    colmask = jnp.stack(mask_rows, axis=0)       # (KW, B)

    kernel = functools.partial(
        _conv_clamp_kernel, Nb=Nb, C=C, KH=KH, KW=KW, PH=PH, PW=PW, W=W, B=B,
        interior=interior, compute_dtype=compute_dtype,
        min_val=float(min_val), max_val=float(max_val))

    cost = pl.CostEstimate(
        flops=2 * N * OC * B * C * KH * KW,
        transcendentals=0,
        bytes_accessed=(x_flat.size * x_flat.dtype.itemsize
                        + w_packed.size * w_packed.dtype.itemsize
                        + b_col.size * 4
                        + colmask.size * colmask.dtype.itemsize
                        + N * OC * B * jnp.dtype(out_dtype).itemsize))

    out = pl.pallas_call(
        kernel,
        out_shape=jax.ShapeDtypeStruct((N, OC, B), out_dtype),
        grid=(N // Nb,),
        in_specs=[
            pl.BlockSpec((Nb, C, B), lambda n: (n, 0, 0)),     # raw images
            pl.BlockSpec((OC, K), lambda n: (0, 0)),           # packed weights
            pl.BlockSpec((OC, 1), lambda n: (0, 0)),           # bias
            pl.BlockSpec((KW, B), lambda n: (0, 0)),           # column masks
        ],
        out_specs=pl.BlockSpec((Nb, OC, B), lambda n: (n, 0, 0)),
        scratch_shapes=[pltpu.VMEM((Cp, S), jnp.float32)],     # flat padded image
        compiler_params=pltpu.CompilerParams(
            dimension_semantics=("parallel",)),
        cost_estimate=cost,
    )(x_flat, w_packed, b_col, colmask)

    return out.reshape(N, OC, H, W)              # metadata reshape only


if __name__ == "__main__":
    key = jax.random.PRNGKey(0)
    k_x, k_w, k_b = jax.random.split(key, 3)

    # Small shapes consistent with the Conv2d + clamp pattern.
    N, C, H, W = 2, 3, 16, 16
    OC, KH, KW = 8, 3, 3
    min_val, max_val = -0.5, 0.5

    x = jax.random.normal(k_x, (N, C, H, W), dtype=jnp.float32)
    weight = jax.random.normal(k_w, (OC, C, KH, KW), dtype=jnp.float32) * 0.1
    bias = jax.random.normal(k_b, (OC,), dtype=jnp.float32) * 0.1

    out = conv2d_clamp(x, weight, bias, min_val, max_val)
    out = jax.block_until_ready(out)
    assert out.shape == (N, OC, H, W)

    # Reference conv + clamp (pure JAX).
    def ref_conv(xr, wr):
        r = jax.lax.conv_general_dilated(
            xr, wr, window_strides=(1, 1),
            padding=((KH // 2, KH // 2), (KW // 2, KW // 2)),
            dimension_numbers=("NCHW", "OIHW", "NCHW"),
            preferred_element_type=jnp.float32)
        r = r + bias.reshape(1, OC, 1, 1)
        return jnp.clip(r, min_val, max_val)

    # Exact-numerics check: same bf16 operand rounding, f32 accumulation.
    ref_bf16 = ref_conv(x.astype(jnp.bfloat16).astype(jnp.float32),
                        weight.astype(jnp.bfloat16).astype(jnp.float32))
    # Looser sanity check against the full-f32 conv.
    ref_f32 = ref_conv(x, weight)

    assert jnp.allclose(out, ref_bf16, atol=1e-3, rtol=1e-3), \
        float(jnp.max(jnp.abs(out - ref_bf16)))
    assert jnp.allclose(out, ref_f32, atol=5e-2, rtol=5e-2)

    print("KERNEL_OK")
</pallas_src>

<mosaic_0001>
module attributes {stable_mosaic.version = 11 : i64} {
  func.func @_conv_clamp_kernel(%arg0: i32, %arg1: memref<1x3x256xf32, #tpu.memory_space<vmem>>, %arg2: memref<8x144xbf16, #tpu.memory_space<vmem>>, %arg3: memref<8x1xf32, #tpu.memory_space<vmem>>, %arg4: memref<3x256xbf16, #tpu.memory_space<vmem>>, %arg5: memref<1x8x256xf32, #tpu.memory_space<vmem>>, %arg6: memref<16x401xf32, #tpu.memory_space<vmem>>) attributes {dimension_semantics = [#tpu.dimension_semantics<parallel>], iteration_bounds = array<i64: 2>, scalar_prefetch = 0 : i64, scratch_operands = 1 : i64, tpu.core_type = #tpu.core_type<tc>, window_params = [{transform_indices = @transform_0, window_bounds = array<i64: 1, 3, 256>}, {pipeline_mode = #tpu.pipeline_mode<synchronous>, transform_indices = @transform_1, window_bounds = array<i64: 8, 144>}, {pipeline_mode = #tpu.pipeline_mode<synchronous>, transform_indices = @transform_2, window_bounds = array<i64: 8, 1>}, {pipeline_mode = #tpu.pipeline_mode<synchronous>, transform_indices = @transform_3, window_bounds = array<i64: 3, 256>}, {transform_indices = @transform_4, window_bounds = array<i64: 1, 8, 256>}]} {
    %cst = arith.constant 0.000000e+00 : f32
    %0 = vector.broadcast %cst : f32 to vector<16x401xf32>
    %c0 = arith.constant 0 : index
    %c0_0 = arith.constant 0 : index
    %1 = vector.load %arg6[%c0, %c0_0] : memref<16x401xf32, #tpu.memory_space<vmem>>, vector<16x401xf32>
    tpu.vector_store %arg6[%c0, %c0_0], %0 {strides = array<i32>} : memref<16x401xf32, #tpu.memory_space<vmem>>, vector<16x401xf32>,
    %c0_1 = arith.constant 0 : index
    %c0_2 = arith.constant 0 : index
    %2 = vector.load %arg2[%c0_1, %c0_2] : memref<8x144xbf16, #tpu.memory_space<vmem>>, vector<8x144xbf16>
    %c0_3 = arith.constant 0 : index
    %c0_4 = arith.constant 0 : index
    %3 = vector.load %arg3[%c0_3, %c0_4] : memref<8x1xf32, #tpu.memory_space<vmem>>, vector<8x1xf32>
    %c0_5 = arith.constant 0 : index
    %c0_6 = arith.constant 0 : index
    %4 = vector.load %arg4[%c0_5, %c0_6] : memref<3x256xbf16, #tpu.memory_space<vmem>>, vector<3x256xbf16>
    %5 = vector.extract_strided_slice %4 {offsets = [0, 0], sizes = [1, 256], strides = [1, 1]} : vector<3x256xbf16> to vector<1x256xbf16>
    %6 = vector.extract_strided_slice %4 {offsets = [2, 0], sizes = [1, 256], strides = [1, 1]} : vector<3x256xbf16> to vector<1x256xbf16>
    %c0_7 = arith.constant 0 : index
    %c0_8 = arith.constant 0 : index
    %c0_9 = arith.constant 0 : index
    %7 = vector.load %arg1[%c0_7, %c0_8, %c0_9] : memref<1x3x256xf32, #tpu.memory_space<vmem>>, vector<1x3x256xf32>
    %8 = vector.shape_cast %7 : vector<1x3x256xf32> to vector<3x256xf32>
    %c0_10 = arith.constant 0 : index
    %c128 = arith.constant 128 : index
    %9 = vector.load %arg6[%c0_10, %c128] : memref<16x401xf32, #tpu.memory_space<vmem>>, vector<3x256xf32>
    tpu.vector_store %arg6[%c0_10, %c128], %8 {strides = array<i32>} : memref<16x401xf32, #tpu.memory_space<vmem>>, vector<3x256xf32>,
    %c0_11 = arith.constant 0 : index
    %c0_12 = arith.constant 0 : index
    %10 = vector.load %arg6[%c0_11, %c0_12] : memref<16x401xf32, #tpu.memory_space<vmem>>, vector<16x401xf32>
    %11 = arith.truncf %10 : vector<16x401xf32> to vector<16x401xbf16>
    %12 = vector.extract_strided_slice %11 {offsets = [0, 111], sizes = [16, 256], strides = [1, 1]} : vector<16x401xbf16> to vector<16x256xbf16>
    %13 = vector.broadcast %5 : vector<1x256xbf16> to vector<16x256xbf16>
    %14 = arith.mulf %12, %13 : vector<16x256xbf16>
    %15 = vector.extract_strided_slice %11 {offsets = [0, 112], sizes = [16, 256], strides = [1, 1]} : vector<16x401xbf16> to vector<16x256xbf16>
    %16 = vector.extract_strided_slice %11 {offsets = [0, 113], sizes = [16, 256], strides = [1, 1]} : vector<16x401xbf16> to vector<16x256xbf16>
    %17 = vector.broadcast %6 : vector<1x256xbf16> to vector<16x256xbf16>
    %18 = arith.mulf %16, %17 : vector<16x256xbf16>
    %19 = vector.extract_strided_slice %11 {offsets = [0, 127], sizes = [16, 256], strides = [1, 1]} : vector<16x401xbf16> to vector<16x256xbf16>
    %20 = vector.broadcast %5 : vector<1x256xbf16> to vector<16x256xbf16>
    %21 = arith.mulf %19, %20 : vector<16x256xbf16>
    %22 = vector.extract_strided_slice %11 {offsets = [0, 128], sizes = [16, 256], strides = [1, 1]} : vector<16x401xbf16> to vector<16x256xbf16>
    %23 = vector.extract_strided_slice %11 {offsets = [0, 129], sizes = [16, 256], strides = [1, 1]} : vector<16x401xbf16> to vector<16x256xbf16>
    %24 = vector.broadcast %6 : vector<1x256xbf16> to vector<16x256xbf16>
    %25 = arith.mulf %23, %24 : vector<16x256xbf16>
    %26 = vector.extract_strided_slice %11 {offsets = [0, 143], sizes = [16, 256], strides = [1, 1]} : vector<16x401xbf16> to vector<16x256xbf16>
    %27 = vector.broadcast %5 : vector<1x256xbf16> to vector<16x256xbf16>
    %28 = arith.mulf %26, %27 : vector<16x256xbf16>
    %29 = vector.extract_strided_slice %11 {offsets = [0, 144], sizes = [16, 256], strides = [1, 1]} : vector<16x401xbf16> to vector<16x256xbf16>
    %30 = vector.extract_strided_slice %11 {offsets = [0, 145], sizes = [16, 256], strides = [1, 1]} : vector<16x401xbf16> to vector<16x256xbf16>
    %31 = vector.broadcast %6 : vector<1x256xbf16> to vector<16x256xbf16>
    %32 = arith.mulf %30, %31 : vector<16x256xbf16>
    %33 = tpu.concatenate %14, %15, %18, %21, %22, %25, %28, %29, %32 in 0 : vector<16x256xbf16>, vector<16x256xbf16>, vector<16x256xbf16>, vector<16x256xbf16>, vector<16x256xbf16>, vector<16x256xbf16>, vector<16x256xbf16>, vector<16x256xbf16>, vector<16x256xbf16> -> vector<144x256xbf16>
    %cst_13 = arith.constant dense<0.000000e+00> : vector<8x256xf32>
    %34 = tpu.matmul %2, %33, %cst_13 {dimension_numbers = #tpu.dot_dimension_numbers<[1], [0], [0], [1], [0, 0, 1, 1], [], []>} : vector<8x144xbf16>, vector<144x256xbf16>, vector<8x256xf32> -> vector<8x256xf32>
    %35 = vector.broadcast %3 : vector<8x1xf32> to vector<8x256xf32>
    %36 = arith.addf %34, %35 : vector<8x256xf32>
    %cst_14 = arith.constant -5.000000e-01 : f32
    %37 = vector.broadcast %cst_14 : f32 to vector<8x256xf32>
    %38 = arith.maximumf %36, %37 : vector<8x256xf32>
    %cst_15 = arith.constant 5.000000e-01 : f32
    %39 = vector.broadcast %cst_15 : f32 to vector<8x256xf32>
    %40 = arith.minimumf %38, %39 : vector<8x256xf32>
    %c0_16 = arith.constant 0 : index
    %c0_17 = arith.constant 0 : index
    %c0_18 = arith.constant 0 : index
    %41 = vector.load %arg5[%c0_16, %c0_17, %c0_18] : memref<1x8x256xf32, #tpu.memory_space<vmem>>, vector<1x8x256xf32>
    %42 = vector.shape_cast %41 : vector<1x8x256xf32> to vector<8x256xf32>
    %43 = vector.shape_cast %40 : vector<8x256xf32> to vector<1x8x256xf32>
    tpu.vector_store %arg5[%c0_16, %c0_17, %c0_18], %43 {strides = array<i32>} : memref<1x8x256xf32, #tpu.memory_space<vmem>>, vector<1x8x256xf32>,
    return
  }
  func.func @transform_0(%arg0: i32) -> (i32, i32, i32) {
    %c0_i32 = arith.constant 0 : i32
    %c0_i32_0 = arith.constant 0 : i32
    %c0_i32_1 = arith.constant 0 : i32
    return %arg0, %c0_i32, %c0_i32_0 : i32, i32, i32
  }
  func.func @transform_1(%arg0: i32) -> (i32, i32) {
    %c0_i32 = arith.constant 0 : i32
    %c0_i32_0 = arith.constant 0 : i32
    %c0_i32_1 = arith.constant 0 : i32
    return %c0_i32, %c0_i32_0 : i32, i32
  }
  func.func @transform_2(%arg0: i32) -> (i32, i32) {
    %c0_i32 = arith.constant 0 : i32
    %c0_i32_0 = arith.constant 0 : i32
    %c0_i32_1 = arith.constant 0 : i32
    return %c0_i32, %c0_i32_0 : i32, i32
  }
  func.func @transform_3(%arg0: i32) -> (i32, i32) {
    %c0_i32 = arith.constant 0 : i32
    %c0_i32_0 = arith.constant 0 : i32
    %c0_i32_1 = arith.constant 0 : i32
    return %c0_i32, %c0_i32_0 : i32, i32
  }
  func.func @transform_4(%arg0: i32) -> (i32, i32, i32) {
    %c0_i32 = arith.constant 0 : i32
    %c0_i32_0 = arith.constant 0 : i32
    %c0_i32_1 = arith.constant 0 : i32
    return %arg0, %c0_i32, %c0_i32_0 : i32, i32, i32
  }
}

</mosaic_0001>

<bundles_post_ra>
// kernel: tpu_custom_call.1
= control target key start
LH: loop header
LB: loop body
LE: loop exit
PB: predicated region body
PF: predicated region fallthrough
CT: control target
= control target key end

     0   :  { %9 = vsyncpa [#allocation4], 0  ;;  %s1038_s0 = inlined_call_operand.vmem [shape: f32[2,3,256], index: 0, kind: input, shape index: {}]   ;;  %s1039_s1 = inlined_call_operand.vmem [shape: bf16[8,144], index: 1, kind: input, shape index: {}]   ;;  %s1040_s2 = inlined_call_operand.vmem [shape: f32[8,1], index: 2, kind: input, shape index: {}]   ;;  %s1041_s3 = inlined_call_operand.vmem [shape: bf16[3,256], index: 3, kind: input, shape index: {}]   ;;  %s1042_s4 = inlined_call_operand.hbm [shape: f32[2,8,256], index: 4, kind: output, shape index: {}]  }
   0x1   :  { %11 = vsyncpa [#allocation4 + $0x1], 0  ;;  %s828_s15 = smov 0   ;;  %s830_s16 = smov 0  }
   0x2   :  { %s832_s17 = smov 0   ;;  %s834_s18 = smov 0  }
   0x3 LB: > { %s849_s19 = sadd.s32 4294967295, %s785_s18   ;;  %s649_s20 = sadd.s32 4294967294, %s785_s18   ;;  %s785_s18 = sphi %s834_s18, %s1048_s18   ;;  %s781_s17 = sphi %s832_s17, %s1047_s17   ;;  %s777_s16 = sphi %s830_s16, %s1046_s16   ;;  %s773_s15 = sphi %s828_s15, %s1045_s15  }
   0x4   : > { %s853_s21 = sadd.s32 1, %s785_s18   ;;  %s113_s22 = sadd.s32 1, %s781_s17 }
   0x5   : > { %s110_s23 = ssub.s32 %s785_s18, %s853_s21  ;;  %p123_p0 = scmp.ne.s32.totalorder %s781_s17, %s777_s16 }
   0x6   : > { %p111_p1 = scmp.eq.s32.totalorder %s110_s23, 0  ;;  %p124_p2 = scmp.eq.s32.totalorder %s849_s19, 1 }
   0x7   : > { %p129_p3 = scmp.ne.s32.totalorder %s777_s16, %s773_s15  ;;  %p130_p4 = scmp.eq.s32.totalorder %s649_s20, 1 }
   0x8   : > { %s864_s24 = scalar_select %p111_p1, %s781_s17, %s113_s22  }
   0x9   : > { %p866_p5 = por %p124_p2, %p123_p0  ;;  %p870_p6 = por %p130_p4, %p129_p3 }
   0xa   : > { %p652_p7 = scmp.ge.s32.totalorder %s785_s18, 1  ;;  %p165_p8 = scmp.lt.s32.totalorder %s785_s18, 3 }
   0xc   : > { %p166_p9 = pnand %p652_p7, %p165_p8 }
   0xd   : > { %p191_p10 = scmp.lt.s32.totalorder (!%p166_p9), %s849_s19, 1  ;;  %s788_s8 = smov (!%p166_p9), 1  }
   0xe   : > { %169 = sbr.rel (%p166_p9) target bundleno = 642 (0x282), region = 36  ;;  %s789_s9 = smov (!%p166_p9), 15  }
   0xf   : > { %s790_s10 = smov (!%p166_p9), 127   ;;  %s791_s11 = smov (!%p166_p9), 113  }
  0x10   : > { %s792_s12 = smov (!%p166_p9), 17   ;;  %s793_s13 = smov (!%p166_p9), 95  }
  0x11   : > { %s794_s14 = smov (!%p166_p9), 111   ;;  %s795_s20 = smov (!%p166_p9), 110  }
  0x12   : > { %s796_s22 = smov (!%p166_p9), 96   ;;  %s797_s23 = smov (!%p166_p9), 112  }
  0x13   : > { %v656_v0 = vld.sshfl [vmem:[%s1041_s3] sm:$0x33 pattern:$0x76325410]  ;;  %v239_v1 = vlaneseq  ;;  %vm200_vm0 = vcmask 138240   ;;  %v787_v5 = vmov 0.0  }
  0x14   : > { %v235_v2 = vcombine.high %v656_v0, %v656_v0  ;;  %v237_v3 = vpack.i.b16 %v656_v0, %v656_v0  ;;  %198 = vst [vmem:[#allocation2 + $0x8] sm:$0xff] %v787_v5  ;;  %199 = vst [vmem:[#allocation2 + $0x10] sm:$0xff] %v787_v5  ;;  %s192_s29 = scalar_select %p191_p10, %s849_s19, 1  ;;  %vm314_vm1 = vcmask 121856   ;;  %vm302_vm2 = vcmask 7168  }
  0x15   : > { %v240_v4 = vshrl.u32 %v239_v1, 7  ;;  %201 = vst.msk [vmem:[#allocation2 + $0x18] sm:$0xff] %vm200_vm0, %v787_v5  ;;  %205 = vst.msk [vmem:[#allocation2 + $0x38] sm:$0xff] %vm200_vm0, %v787_v5  ;;  %vm290_vm3 = vcmask 1039360   ;;  %vm278_vm4 = vcmask 924672   ;;  %s798_s27 = smov 126  }
  0x16   : > { %v244_v8 = vpack.i.b16 %v235_v2, %v235_v2  ;;  %s667_s30 = sshll.u32 %s192_s29, 3  ;;  %v799_v48 = vmov 0.0|0.0   ;;  %s800_s28 = smov 94   ;;  %vm405_vm5 = vcmask 777216   ;;  %vm256_vm6 = vcmask 908288  }
  0x17   : > { %v266_v6 = vsub.s32 1, %v240_v4  ;;  %v241_v7 = vsub.s32 0, %v240_v4  ;;  %s195_s7 = scalar_lea.vmem %s1038_s0, %s667_s30  ;;  %vm395_vm7 = vcmask 785408   ;;  %vm383_vm8 = vcmask 900096  }
  0x18   : > { %v209_v13 = vld [vmem:[%s195_s7] sm:$0x77]  ;;  %vm354_vm9 = vcmask 1031168   ;;  %vm366_vm10 = vcmask 916480   ;;  %vm417_vm11 = vcmask 769024   ;;  %vm524_vm12 = vcmask 130048  }
  0x19   : > { %v267_v9 = vrot.slane %v237_v3, %v266_v6  ;;  %v883_v10 = vrot.slane %v237_v3, %v241_v7  ;;  %v271_v11 = vrot.slane %v244_v8, %v266_v6  ;;  %v889_v12 = vrot.slane %v244_v8, %v241_v7  ;;  %213 = vst [vmem:[#allocation2 + $0x8] sm:$0x7] %v209_v13  ;;  %s188_s7 = sand.u32 1, %s777_s16  }
  0x1a   : > { %v211_v14 = vcombine.high %v209_v13, %v209_v13 }
  0x1b   : > { %298 = vrot.lane.b32.xlu1 %v267_v9, %s788_s8  ;;  %310 = vrot.lane.b32.xlu0 %v883_v10, %s789_s9 }
  0x1c   : > { %214 = vst [vmem:[#allocation2 + $0x10] sm:$0x7] %v211_v14  ;;  %v218_v19 = vld [vmem:[#allocation2 + $0x18] sm:$0xff] }
  0x1d   : > { %v222_v20 = vld [vmem:[#allocation2 + $0x38] sm:$0xff] }
  0x1e   : > { %v903_v21 = vpack.c.bf16 %v222_v20, %v218_v19 }
  0x1f   : > { %300 = vrot.lane.b32.xlu1 %v271_v11, %s788_s8  ;;  %312 = vrot.lane.b32.xlu0 %v889_v12, %s789_s9  ;;  %s653_s8 = sshll.u32 %s188_s7, 4  ;;  %s668_s9 = sshll.u32 %s849_s19, 8 }
  0x20   : > { %v216_v15 = vld [vmem:[#allocation2 + $0x8] sm:$0xff]  ;;  %s802_s19 = smov [#allocation3]  }
  0x21   : > { %v898_v17 = vpack.c.bf16 %v787_v5, %v216_v15 }
  0x23   : > { %288 = vrot.lane.b32.xlu1 %v889_v12, %s790_s10  ;;  %286 = vrot.lane.b32.xlu0 %v883_v10, %s790_s10  ;;  %v217_v16 = vld [vmem:[#allocation2 + $0x10] sm:$0xff] }
  0x24   : > { %v900_v18 = vpack.c.bf16 %v787_v5, %v217_v16 }
  0x27   : > { %276 = vrot.lane.b32.xlu1 %v271_v11, %s791_s11  ;;  %274 = vrot.lane.b32.xlu0 %v267_v9, %s791_s11 }
  0x2b   : > { %322 = vrot.lane.b32.xlu0 %v267_v9, %s792_s12  ;;  %324 = vrot.lane.b32.xlu1 %v271_v11, %s792_s12 }
  0x2f   : > { %399 = vrot.lane.b32.xlu0 %v898_v17, %s793_s13  ;;  %401 = vrot.lane.b32.xlu1 %v900_v18, %s793_s13 }
  0x33   : > { %403 = vrot.lane.b32.xlu0 %v903_v21, %s793_s13  ;;  %369 = vrot.lane.b32.xlu1 %v898_v17, %s794_s14 }
  0x37   : > { %371 = vrot.lane.b32.xlu0 %v900_v18, %s794_s14 }
  0x8d   : > { %v299_v22 = vpop.permute.xlu1 %298  ;;  %v311_v23 = vpop.permute.xlu0 %310 }
  0x8e   : > { %v307_v24 = vmul.bf16 %v299_v22, %v898_v17  ;;  %v319_v25 = vmul.bf16 %v311_v23, %v898_v17 }
  0x90   : > { %377 = vrot.lane.b32.xlu0 %v307_v24, %s795_s20  ;;  %389 = vrot.lane.b32.xlu1 %v319_v25, %s796_s22 }
  0x91   : > { %v301_v26 = vpop.permute.xlu1 %300  ;;  %v313_v27 = vpop.permute.xlu0 %312 }
  0x92   : > { %v309_v28 = vmul.bf16 %v301_v26, %v903_v21  ;;  %v321_v29 = vmul.bf16 %v313_v27, %v903_v21  ;;  %v315_v30 = vsel %vm314_vm1, %v311_v23, %v313_v27  ;;  %v303_v35 = vsel %vm302_vm2, %v299_v22, %v301_v26 }
  0x93   : > { %v320_v33 = vmul.bf16 %v315_v30, %v900_v18  ;;  %v308_v39 = vmul.bf16 %v303_v35, %v900_v18 }
  0x94   : > { %381 = vrot.lane.b32.xlu0 %v309_v28, %s795_s20  ;;  %393 = vrot.lane.b32.xlu1 %v321_v29, %s796_s22 }
  0x95   : > { %v289_v31 = vpop.permute.xlu1 %288  ;;  %v287_v32 = vpop.permute.xlu0 %286 }
  0x96   : > { %v295_v34 = vmul.bf16 0.0|0.0, %v287_v32  ;;  %v297_v36 = vmul.bf16 %v289_v31, %v900_v18  ;;  %v291_v42 = vsel %vm290_vm3, %v287_v32, %v289_v31 }
  0x97   : > { %v296_v43 = vmul.bf16 %v291_v42, %v898_v17 }
  0x98   : > { %360 = vrot.lane.b32.xlu1 %v295_v34, %s797_s23  ;;  %391 = vrot.lane.b32.xlu0 %v320_v33, %s796_s22  ;;  %v964_v34 = vld [vmem:[%s1039_s1] sm:$0xff] }
  0x99   : > { %v277_v37 = vpop.permute.xlu1 %276  ;;  %v275_v38 = vpop.permute.xlu0 %274 }
  0x9a   : > { %v285_v40 = vmul.bf16 %v277_v37, %v900_v18  ;;  %v283_v41 = vmul.bf16 0.0|0.0, %v275_v38  ;;  %v279_v44 = vsel %vm278_vm4, %v275_v38, %v277_v37 }
  0x9b   : > { %v284_v45 = vmul.bf16 %v279_v44, %v898_v17 }
  0x9c   : > { %379 = vrot.lane.b32.xlu1 %v308_v39, %s795_s20  ;;  %364 = vrot.lane.b32.xlu0 %v297_v36, %s797_s23  ;;  %s576_s20 = scalar_lea.sflag [#allocation4], %s188_s7 }
  0x9d   : > { %v323_v46 = vpop.permute.xlu0 %322  ;;  %v325_v47 = vpop.permute.xlu1 %324 }
  0x9e   : > { %v331_v49 = vmul.bf16 %v323_v46, %v898_v17  ;;  %v327_v50 = vsel %vm200_vm0, %v323_v46, %v325_v47  ;;  %v333_v54 = vmul.bf16 %v325_v47, %v903_v21 }
  0x9f   : > { %v332_v53 = vmul.bf16 %v327_v50, %v900_v18 }
  0xa0   : > { %348 = vrot.lane.b32.xlu0 %v283_v41, %s798_s27  ;;  %352 = vrot.lane.b32.xlu1 %v285_v40, %s798_s27  ;;  %v801_v40 = vmov 0   ;;  %v207_v41 = vld [vmem:[%s1040_s2] sm:$0xff] }
  0xa1   : > { %v400_v51 = vpop.permute.xlu0 %399  ;;  %v402_v52 = vpop.permute.xlu1 %401  ;;  %722 = vset.pattern.permute.xlu0 %v801_v40 }
  0xa2   : > { %v406_v59 = vsel %vm405_vm5, %v400_v51, %v402_v52 }
  0xa4   : > { %341 = vrot.lane.b32.xlu0 %v900_v18, %s790_s10  ;;  %362 = vrot.lane.b32.xlu1 %v296_v43, %s797_s23  ;;  %s729_s23 = sshll.u32 %s802_s19, 4  ;;  %s730_s23 = int_to_ptr.vmem [resolvable:$false] %s729_s23 }
  0xa5   : > { %v404_v55 = vpop.permute.xlu0 %403  ;;  %v370_v56 = vpop.permute.xlu1 %369 }
  0xa6   : > { %v407_v58 = vsel %vm405_vm5, %v402_v52, %v404_v55 }
  0xa8   : > { %350 = vrot.lane.b32.xlu0 %v284_v45, %s798_s27  ;;  %339 = vrot.lane.b32.xlu1 %v898_v17, %s790_s10  ;;  %s731_s27 = scalar_lea.vmem %s730_s23, 512 }
  0xa9   : > { %v372_v57 = vpop.permute.xlu0 %371 }
  0xaa   : > { %v373_v60 = vsel %vm256_vm6, %v370_v56, %v372_v57 }
  0xac   : > { %337 = vrot.lane.b32.xlu1 %v799_v48, %s790_s10  ;;  %252 = vrot.lane.b32.xlu0 %v883_v10, %s794_s14  ;;  %s190_s10 = scalar_lea.vmem [#allocation3], %s653_s8 }
  0xad   : > { %s590_s11 = sshll.u32 %s190_s10, 4  ;;  %s591_s11 = int_to_ptr.vmem [resolvable:$true] %s590_s11 }
  0xae   : > { %s725_s22 = scalar_lea.vmem %s591_s11, 256  ;;  %p732_p0 = scmp.lt.s32.totalorder %s591_s11, %s730_s23 }
  0xaf   : > { %p726_p11 = scmp.ne.s32.totalorder %s591_s11, %s725_s22  ;;  %p733_p1 = scmp.lt.s32.totalorder %s731_s27, %s725_s22 }
  0xb0   : > { %254 = vrot.lane.b32.xlu1 %v889_v12, %s794_s14  ;;  %411 = vrot.lane.b32.xlu0 %v331_v49, %s800_s28  ;;  %s1003_s14 = scalar_lea.hbm %s1042_s4, %s668_s9 }
  0xb1   : > { %p727_p12 = pnand %p726_p11, %p866_p5  ;;  %p734_p2 = por %p733_p1, %p732_p0 }
  0xb3   : > { %p728_p13 = pneg %p727_p12 }
  0xb4   : > { %415 = vrot.lane.b32.xlu0 %v333_v54, %s800_s28  ;;  %413 = vrot.lane.b32.xlu1 %v332_v53, %s800_s28 }
  0xb5   : > { %p735_p3 = pnand %p734_p2, %p728_p13 }
  0xb8   : > { %476 = vrot.lane.b32.xlu1 %v400_v51, %s792_s12  ;;  %458 = vrot.lane.b32.xlu0 %v370_v56, %s792_s12 }
  0xbc   : > { %462 = vrot.lane.b32.xlu1 %v372_v57, %s792_s12  ;;  %480 = vrot.lane.b32.xlu0 %v407_v58, %s792_s12 }
  0xc0   : > { %478 = vrot.lane.b32.xlu1 %v406_v59, %s792_s12  ;;  %460 = vrot.lane.b32.xlu0 %v373_v60, %s792_s12 }
 0x102   : > { %v378_v61 = vpop.permute.xlu0 %377  ;;  %v390_v62 = vpop.permute.xlu1 %389 }
 0x103   : > { %470 = vrot.lane.b32.xlu0 %v390_v62, %s792_s12  ;;  %464 = vrot.lane.b32.xlu1 %v378_v61, %s792_s12 }
 0x106   : > { %v382_v63 = vpop.permute.xlu0 %381  ;;  %v394_v0 = vpop.permute.xlu1 %393 }
 0x10a   : > { %v361_v1 = vpop.permute.xlu1 %360  ;;  %v392_v2 = vpop.permute.xlu0 %391 }
 0x10b   : > { %v396_v7 = vsel %vm395_vm7, %v390_v62, %v392_v2  ;;  %v397_v11 = vsel %vm395_vm7, %v392_v2, %v394_v0 }
 0x10e   : > { %v380_v3 = vpop.permute.xlu1 %379  ;;  %v365_v4 = vpop.permute.xlu0 %364 }
 0x10f   : > { %456 = vrot.lane.b32.xlu0 %v365_v4, %s792_s12  ;;  %v385_v10 = vsel %vm383_vm8, %v380_v3, %v382_v63  ;;  %v384_v14 = vsel %vm383_vm8, %v378_v61, %v380_v3 }
 0x112   : > { %v349_v5 = vpop.permute.xlu0 %348  ;;  %v353_v6 = vpop.permute.xlu1 %352 }
 0x113   : > { %472 = vrot.lane.b32.xlu0 %v396_v7, %s792_s12  ;;  %450 = vrot.lane.b32.xlu1 %v353_v6, %s792_s12 }
 0x116   : > { %v342_v8 = vpop.permute.xlu0 %341  ;;  %v363_v9 = vpop.permute.xlu1 %362 }
 0x117   : > { %468 = vrot.lane.b32.xlu0 %v385_v10, %s792_s12  ;;  %474 = vrot.lane.b32.xlu1 %v397_v11, %s792_s12  ;;  %v368_v22 = vsel %vm366_vm10, %v363_v9, %v365_v4  ;;  %v367_v27 = vsel %vm366_vm10, %v361_v1, %v363_v9 }
 0x11a   : > { %v351_v12 = vpop.permute.xlu0 %350  ;;  %v340_v13 = vpop.permute.xlu1 %339 }
 0x11b   : > { %444 = vrot.lane.b32.xlu0 %v342_v8, %s792_s12  ;;  %466 = vrot.lane.b32.xlu1 %v384_v14, %s792_s12  ;;  %v344_v15 = vsel %vm290_vm3, %v340_v13, %v342_v8  ;;  %v356_v19 = vsel %vm354_vm9, %v351_v12, %v353_v6  ;;  %v355_v21 = vsel %vm354_vm9, %v349_v5, %v351_v12 }
 0x11e   : > { %v338_v16 = vpop.permute.xlu1 %337  ;;  %v253_v20 = vpop.permute.xlu0 %252 }
 0x11f   : > { %448 = vrot.lane.b32.xlu0 %v356_v19, %s792_s12  ;;  %442 = vrot.lane.b32.xlu1 %v344_v15, %s792_s12  ;;  %v261_v30 = vmul.bf16 0.0|0.0, %v253_v20  ;;  %v343_v31 = vsel %vm290_vm3, %v338_v16, %v340_v13 }
 0x122   : > { %v255_v23 = vpop.permute.xlu1 %254  ;;  %v412_v24 = vpop.permute.xlu0 %411 }
 0x123   : > { %446 = vrot.lane.b32.xlu0 %v355_v21, %s792_s12  ;;  %454 = vrot.lane.b32.xlu1 %v368_v22, %s792_s12  ;;  %v257_v25 = vsel %vm256_vm6, %v253_v20, %v255_v23  ;;  %v263_v36 = vmul.bf16 %v255_v23, %v900_v18  ;;  %v657_v20 = vcombine.low %v964_v34, %v964_v34 }
 0x124   : > { %v262_v26 = vmul.bf16 %v257_v25, %v898_v17  ;;  %v658_v17 = vcombine.high %v964_v34, %v964_v34 }
 0x126   : > { %v416_v28 = vpop.permute.xlu0 %415  ;;  %v414_v29 = vpop.permute.xlu1 %413  ;;  %659 = vmatprep.mubr.msk.bf16.mxu0 %vm524_vm12, %v658_v17 }
 0x127   : > { %452 = vrot.lane.b32.xlu1 %v367_v27, %s792_s12  ;;  %436 = vrot.lane.b32.xlu0 %v262_v26, %s792_s12  ;;  %v419_v35 = vsel %vm417_vm11, %v414_v29, %v416_v28  ;;  %v418_v38 = vsel %vm417_vm11, %v412_v24, %v414_v29 }
 0x12a   : > { %v477_v32 = vpop.permute.xlu1 %476  ;;  %v459_v33 = vpop.permute.xlu0 %458 }
 0x12b   : > { %440 = vrot.lane.b32.xlu1 %v343_v31, %s792_s12  ;;  %434 = vrot.lane.b32.xlu0 %v261_v30, %s792_s12 }
 0x12e   : > { %v463_v37 = vpop.permute.xlu1 %462  ;;  %v481_v39 = vpop.permute.xlu0 %480 }
 0x12f   : > { %438 = vrot.lane.b32.xlu1 %v263_v36, %s792_s12  ;;  %486 = vrot.lane.b32.xlu0 %v419_v35, %s792_s12 }
 0x132   : > { %v479_v42 = vpop.permute.xlu1 %478  ;;  %v461_v44 = vpop.permute.xlu0 %460 }
 0x133   : > { %484 = vrot.lane.b32.xlu1 %v418_v38, %s792_s12  ;;  %v503_v43 = vsel %vm200_vm0, %v479_v42, %v481_v39  ;;  %v502_v18 = vsel %vm200_vm0, %v477_v32, %v479_v42  ;;  %422 = vperm.xlu0 %722, %v207_v41   ;;  %v497_v58 = vsel %vm200_vm0, %v461_v44, %v463_v37 }
 0x134   : > { %528 = vmatprep.subr.bf16.mxu0 %v503_v43  ;;  %v496_v61 = vsel %vm200_vm0, %v459_v33, %v461_v44 }
 0x135   : > { %529 = vmatpush1.bf16.msra.mxu0 %v502_v18 }
 0x137   : > { %482 = vrot.lane.b32.xlu1 %v412_v24, %s792_s12 }
 0x175   : > { %v471_v45 = vpop.permute.xlu0 %470  ;;  %v465_v46 = vpop.permute.xlu1 %464 }
 0x181   : > { %v457_v47 = vpop.permute.xlu0 %456 }
 0x185   : > { %v473_v48 = vpop.permute.xlu0 %472  ;;  %v451_v49 = vpop.permute.xlu1 %450 }
 0x186   : > { %v500_v53 = vsel %vm200_vm0, %v471_v45, %v473_v48 }
 0x189   : > { %v469_v50 = vpop.permute.xlu0 %468  ;;  %v475_v51 = vpop.permute.xlu1 %474 }
 0x18a   : > { %v501_v52 = vsel %vm200_vm0, %v473_v48, %v475_v51 }
 0x18b   : > { %530 = vmatprep.subr.bf16.mxu0 %v501_v52 }
 0x18c   : > { %531 = vmatpush1.bf16.msra.mxu0 %v500_v53 }
 0x18d   : > { %v445_v54 = vpop.permute.xlu0 %444  ;;  %v467_v55 = vpop.permute.xlu1 %466 }
 0x18e   : > { %v499_v56 = vsel %vm200_vm0, %v467_v55, %v469_v50  ;;  %v498_v57 = vsel %vm200_vm0, %v465_v46, %v467_v55 }
 0x18f   : > { %532 = vmatprep.subr.bf16.mxu0 %v499_v56 }
 0x190   : > { %533 = vmatpush1.bf16.msra.mxu0 %v498_v57 }
 0x191   : > { %v449_v59 = vpop.permute.xlu0 %448  ;;  %534 = vmatprep.subr.bf16.mxu0 %v497_v58  ;;  %v443_v60 = vpop.permute.xlu1 %442 }
 0x192   : > { %v493_v4 = vsel %vm200_vm0, %v449_v59, %v451_v49  ;;  %v491_v8 = vsel %vm200_vm0, %v443_v60, %v445_v54 }
 0x194   : > { %535 = vmatpush1.bf16.msra.mxu0 %v496_v61 }
 0x195   : > { %v447_v62 = vpop.permute.xlu0 %446  ;;  %v455_v63 = vpop.permute.xlu1 %454 }
 0x196   : > { %v495_v0 = vsel %vm200_vm0, %v455_v63, %v457_v47  ;;  %v492_v7 = vsel %vm200_vm0, %v447_v62, %v449_v59 }
 0x197   : > { %536 = vmatprep.subr.bf16.mxu0 %v495_v0 }
 0x199   : > { %v453_v1 = vpop.permute.xlu1 %452  ;;  %v437_v2 = vpop.permute.xlu0 %436 }
 0x19a   : > { %v494_v3 = vsel %vm200_vm0, %v453_v1, %v455_v63 }
 0x19b   : > { %537 = vmatpush1.bf16.msra.mxu0 %v494_v3 }
 0x19c   : > { %538 = vmatprep.subr.bf16.mxu0 %v493_v4 }
 0x19d   : > { %v441_v5 = vpop.permute.xlu1 %440  ;;  %v435_v6 = vpop.permute.xlu0 %434 }
 0x19e   : > { %v490_v10 = vsel %vm200_vm0, %v441_v5, %v443_v60  ;;  %v488_v14 = vsel %vm200_vm0, %v435_v6, %v437_v2 }
 0x19f   : > { %539 = vmatpush1.bf16.msra.mxu0 %v492_v7 }
 0x1a0   : > { %540 = vmatprep.subr.bf16.mxu0 %v491_v8 }
 0x1a1   : > { %v439_v9 = vpop.permute.xlu1 %438  ;;  %v487_v12 = vpop.permute.xlu0 %486 }
 0x1a2   : > { %v489_v11 = vsel %vm200_vm0, %v437_v2, %v439_v9 }
 0x1a3   : > { %541 = vmatpush1.bf16.msra.mxu0 %v490_v10 }
 0x1a4   : > { %542 = vmatprep.subr.bf16.mxu0 %v489_v11 }
 0x1a5   : > { %v485_v13 = vpop.permute.xlu1 %484 }
 0x1a6   : > { %v505_v15 = vsel %vm200_vm0, %v485_v13, %v487_v12 }
 0x1a7   : > { %543 = vmatpush1.bf16.msra.mxu0 %v488_v14 }
 0x1a8   : > { %558 = vmatprep.subr.bf16.mxu0 %v505_v15 }
 0x1a9   : > { %v483_v16 = vpop.permute.xlu1 %482 }
 0x1aa   : > { %v504_v19 = vsel %vm200_vm0, %v483_v16, %v485_v13 }
 0x1ab   : > { %559 = vmatpush2.bf16.msra.mxu0 %v504_v19 }
 0x1ae   : > { %561 = vmatmul.mubr.bf16.vlgmr.msra.gmra.mxu0 %v657_v20  ;;  %v423_v21 = vpop.permute.xlu0 %422 }
 0x26e   : > { %v562_v22 = vpop.f32.mrf.mxu0 }
 0x26f   : > { %v563_v23 = vadd.f32 %v562_v22, %v423_v21 }
 0x270   : > { %v564_v24 = vpop.f32.mrf.mxu0 }
 0x271   : > { %v660_v25 = vclamps-f32 %v563_v23, 0.5  ;;  %v565_v26 = vadd.f32 %v564_v24, %v423_v21 }
 0x272   : > { %v566_v27 = vpop.f32.mrf.mxu0 }
 0x273   : > { %573 = vst [vmem:[%s190_s10] sm:$0xff] %v660_v25  ;;  %v661_v28 = vclamps-f32 %v565_v26, 0.5 }
 0x274   : > { %v567_v29 = vpop.f32.mrf.mxu0 }
 0x275   : > { %574 = vst [vmem:[%s190_s10 + $0x8] sm:$0xff] %v661_v28 }
 0x276   : > { %738 = shalt.err (!%p735_p3)
}
 0x277   : > { %s739_s28 = scalar_lea.hbm %s1003_s14, 256  ;;  %s743_s5 = scalar_lea.hbm %s1042_s4, 512 }
 0x278   : > { %p740_p4 = scmp.ne.s32.totalorder %s1003_s14, %s739_s28  ;;  %p744_p9 = scmp.lt.s32.totalorder %s1003_s14, %s1042_s4 }
 0x279   : > { %p745_p10 = scmp.lt.s32.totalorder %s743_s5, %s739_s28 }
 0x27a   : > { %p741_p7 = pnand %p740_p4, %p866_p5 }
 0x27b   : > { %p746_p11 = por %p745_p10, %p744_p9 }
 0x27c   : > { %p742_p8 = pneg %p741_p7 }
 0x27e   : > { %p747_p12 = pnand %p746_p11, %p742_p8 }
 0x280   : > { %750 = shalt.err (!%p747_p12)
}
 0x281   : > { %669 = dma.vmem_to_hbm [thread:$0]  (%p866_p5), %s591_s11, 256, %s1003_s14, %s576_s20  }
 0x282 PF: > { %p675_p13 = scmp.ge.s32.totalorder %s785_s18, 2  ;;  %s602_s8 = sand.u32 1, %s773_s15  }
 0x283   : > { %s603_s9 = scalar_lea.sflag [#allocation4], %s602_s8 }
 0x284   : > { %p672_p0 = pnand %p675_p13, %p870_p6 }
 0x286   : > { %p673_p1 = pneg %p672_p0 }
 0x288   : > { %768 = dma.done.wait (%p673_p1), %s603_s9, 256  }
 0x289   : > { %770 = vsyncadd (%p673_p1), %s603_s9, 4294967040  ;;  %p14_p2 = scmp.ge.s32.totalorder %s853_s21, 4   ;;  %s1045_s15 = smov %s777_s16 }
 0x28a   : > { %s1046_s16 = smov %s781_s17  ;;  %s1047_s17 = smov %s864_s24 }
 0x28b   : > { %s1048_s18 = smov %s853_s21  ;;  %16 = sbr.rel (!%p14_p2) target bundleno = 3 (0x3), region = 71 }
 0x290   :  { %608 = vsyncpa [#allocation4], 1 }
 0x291   :  { %610 = vsyncpa [#allocation4 + $0x1], 1 }

</bundles_post_ra>
